<compile_context>
chip_gen: v7x
topology: tpu7x:2x2x1
jax: 0.10.0
libtpu: 0.0.40
codegen_flags: <defaults>
</compile_context>

<pallas_src>
from functools import partial

import jax
import jax.numpy as jnp
from jax import lax
from jax.experimental import pallas as pl
from jax.experimental.pallas import tpu as pltpu

_LANES = 128
_TILE_BYTES = 2 * 1024 * 1024   # ~2 MiB blocks: >=85% of HBM roofline per step
_FUSE_BYTES = 2 * 1024 * 1024   # whole-tensor-in-VMEM fused path threshold


def _vmem_limit_bytes() -> int:
    # v5e's default scoped VMEM limit is only 16 MiB -> raise explicitly.
    # Keep well under v7x's 64 MiB physical VMEM.
    try:
        cap = pltpu.get_tpu_info().vmem_capacity_bytes
        return int(min(48 * 1024 * 1024, (cap * 3) // 4))
    except Exception:  # info query unavailable -> conservative default
        return 32 * 1024 * 1024


def _round_up(a: int, b: int) -> int:
    return (a + b - 1) // b * b


# ---------------------------------------------------------------------------
# Kernels
# ---------------------------------------------------------------------------
def _fused_kernel(alpha_ref, bias_ref, x_ref, o_ref, *, n, eps):
    """Whole tensor resident in VMEM: exact centered two-pass LayerNorm."""
    x = x_ref[...].astype(jnp.float32)
    mean = jnp.sum(x) / n
    xc = x - mean
    var = jnp.sum(xc * xc) / max(n - 1, 1)            # unbiased (ddof=1)
    inv = 1.0 / (jnp.sqrt(var) + eps)
    o_ref[...] = (alpha_ref[...] * (xc * inv) + bias_ref[...]).astype(o_ref.dtype)


def _stats_kernel(c_ref, x_ref, sum_ref, ssq_ref):
    """Accumulate per-lane shifted sums Σ(x-c), Σ(x-c)^2 across row tiles."""
    @pl.when(pl.program_id(1) == 0)
    def _():
        sum_ref[...] = jnp.zeros_like(sum_ref)
        ssq_ref[...] = jnp.zeros_like(ssq_ref)

    xc = x_ref[...].astype(jnp.float32) - c_ref[...]
    sum_ref[...] += jnp.sum(xc, axis=0, keepdims=True)
    ssq_ref[...] += jnp.sum(xc * xc, axis=0, keepdims=True)


def _normalize_kernel(scale_ref, shift_ref, x_ref, o_ref):
    """y = x * scale + shift  (per-lane scale/shift precomputed once)."""
    x = x_ref[...].astype(jnp.float32)
    o_ref[...] = (x * scale_ref[...] + shift_ref[...]).astype(o_ref.dtype)


# ---------------------------------------------------------------------------
# Wrapper
# ---------------------------------------------------------------------------
@partial(jax.jit, static_argnames=("eps",))
def encoder_forward(x, alpha, bias, mask=None, *, eps: float = 1e-6):
    # TODO(synk): the Encoder's `layers` ModuleList is supplied externally in
    # the PyTorch module and is not defined in the provided source; it is
    # treated as an identity chain here, so `mask` is unused and only the
    # final LayerNormalization is implemented.
    del mask
    B, S, F = x.shape
    R = B * S
    n = R * F
    itemsize = jnp.dtype(x.dtype).itemsize
    vmem_limit = _vmem_limit_bytes()
    alpha_f = alpha.astype(jnp.float32)
    bias_f = bias.astype(jnp.float32)

    # ---- small tensors: fully fused, VMEM-resident single pass -------------
    if n * itemsize <= _FUSE_BYTES:
        out2 = pl.pallas_call(
            partial(_fused_kernel, n=n, eps=eps),
            out_shape=jax.ShapeDtypeStruct((R, F), x.dtype),
            grid=(1,),
            in_specs=[pl.BlockSpec((1, F), lambda i: (0, 0)),
                      pl.BlockSpec((1, F), lambda i: (0, 0)),
                      pl.BlockSpec((R, F), lambda i: (0, 0))],
            out_specs=pl.BlockSpec((R, F), lambda i: (0, 0)),
            compiler_params=pltpu.CompilerParams(vmem_limit_bytes=vmem_limit),
            cost_estimate=pl.CostEstimate(
                flops=8 * n, transcendentals=1, bytes_accessed=2 * n * itemsize),
        )(alpha_f.reshape(1, F), bias_f.reshape(1, F), x.reshape(R, F))
        return out2.reshape(B, S, F)

    # ---- streamed two-pass path ---------------------------------------------
    # Pre-shift c (cheap sample mean) for numerically robust shifted sums; c is
    # also the padding value, so padded elements contribute exactly 0.
    c_x = jnp.mean(x[0, 0].astype(jnp.float32)).astype(x.dtype)
    c = c_x.astype(jnp.float32)

    # Lane-dense layout (global stats => any row-major flatten is valid).
    lane_pad = 0
    if F % _LANES == 0:
        rows, W = R, F
        x2 = x.reshape(rows, W)
        alpha_lane, bias_lane = alpha_f, bias_f
    elif _LANES % F == 0 and (R * F) % _LANES == 0:
        rows, W = (R * F) // _LANES, _LANES
        x2 = x.reshape(rows, W)
        rep = _LANES // F
        alpha_lane, bias_lane = jnp.tile(alpha_f, rep), jnp.tile(bias_f, rep)
    else:
        # Pad features up to a lane multiple -> unmasked 128-wide stores.
        W = _round_up(F, _LANES)
        rows = R
        lane_pad = W - F
        x2 = lax.pad(x.reshape(R, F), c_x, ((0, 0, 0), (0, lane_pad, 0)))
        alpha_lane = jnp.pad(alpha_f, (0, lane_pad))
        bias_lane = jnp.pad(bias_f, (0, lane_pad))

    # Byte-budgeted row tile, multiple of the sublane packing for the dtype.
    # TODO(synk): extremely wide F (>~100K) would additionally need lane tiling.
    sub = 8 * max(1, 4 // itemsize)                     # 8 f32 / 16 bf16 / 32 i8
    target_rows = max(sub, (_TILE_BYTES // (W * itemsize)) // sub * sub)
    tile_r = min(target_rows, _round_up(rows, sub))
    n_splits = 2 if pl.cdiv(rows, tile_r) >= 2 else 1   # 2-way stats split (v7x)
    rows_p = _round_up(rows, n_splits * tile_r)
    if rows_p > rows:
        x2 = lax.pad(x2, c_x, ((0, rows_p - rows, 0), (0, 0, 0)))
    num_tiles = rows_p // tile_r
    tiles_per_split = num_tiles // n_splits

    c_row = jnp.full((1, W), c, jnp.float32)

    # pass 1: per-lane shifted sum / sum-of-squares, output-resident accumulators
    part_sum, part_ssq = pl.pallas_call(
        _stats_kernel,
        out_shape=(jax.ShapeDtypeStruct((1, n_splits * W), jnp.float32),
                   jax.ShapeDtypeStruct((1, n_splits * W), jnp.float32)),
        grid=(n_splits, tiles_per_split),
        in_specs=[pl.BlockSpec((1, W), lambda sp, it: (0, 0)),
                  pl.BlockSpec((tile_r, W),
                               lambda sp, it: (sp * tiles_per_split + it, 0))],
        out_specs=(pl.BlockSpec((1, W), lambda sp, it: (0, sp)),
                   pl.BlockSpec((1, W), lambda sp, it: (0, sp))),
        compiler_params=pltpu.CompilerParams(
            dimension_semantics=("parallel", "arbitrary"),
            vmem_limit_bytes=vmem_limit),
        cost_estimate=pl.CostEstimate(
            flops=4 * rows_p * W, transcendentals=0,
            bytes_accessed=rows_p * W * itemsize),
    )(c_row, x2)

    # tiny scalar epilogue: hoist the divide out of the element-wise path.
    s = jnp.sum(part_sum)                       # Σ(x - c) over real elements
    ss = jnp.sum(part_ssq)                      # Σ(x - c)^2
    mean = c + s / n
    var = jnp.maximum((ss - (s * s) / n) / max(n - 1, 1), 0.0)   # ddof=1
    inv = 1.0 / (jnp.sqrt(var) + eps)
    scale = (alpha_lane * inv).reshape(1, W)
    shift = (bias_lane - mean * (alpha_lane * inv)).reshape(1, W)

    # pass 2: one FMA per element, lane-dense unmasked stores, megacore-parallel
    out2 = pl.pallas_call(
        _normalize_kernel,
        out_shape=jax.ShapeDtypeStruct((rows_p, W), x.dtype),
        grid=(num_tiles,),
        in_specs=[pl.BlockSpec((1, W), lambda i: (0, 0)),
                  pl.BlockSpec((1, W), lambda i: (0, 0)),
                  pl.BlockSpec((tile_r, W), lambda i: (i, 0))],
        out_specs=pl.BlockSpec((tile_r, W), lambda i: (i, 0)),
        compiler_params=pltpu.CompilerParams(
            dimension_semantics=("parallel",),
            vmem_limit_bytes=vmem_limit),
        cost_estimate=pl.CostEstimate(
            flops=2 * rows_p * W, transcendentals=0,
            bytes_accessed=2 * rows_p * W * itemsize),
    )(scale, shift, x2)

    if rows_p > rows:
        out2 = out2[:rows]
    if lane_pad:
        out2 = out2[:, :F]
    return out2.reshape(B, S, F)


def _reference(x, alpha, bias, eps=1e-6):
    """Pure-JAX reference mirroring the PyTorch semantics exactly."""
    mean = jnp.mean(x)                 # scalar, over all elements
    std = jnp.std(x, ddof=1)           # unbiased, over all elements
    return alpha * (x - mean) / (std + eps) + bias


if __name__ == "__main__":
    key = jax.random.PRNGKey(0)
    kx, ka, kb, k3, k4 = jax.random.split(key, 5)

    # 1) small shape (fused VMEM-resident path), params at PyTorch init
    B, S, F = 2, 8, 32                 # batch=2, seq=8, features(hidden)=32
    x = jax.random.normal(kx, (B, S, F), dtype=jnp.float32)
    alpha0 = jnp.ones((F,), jnp.float32)
    bias0 = jnp.zeros((F,), jnp.float32)
    out0 = jax.block_until_ready(encoder_forward(x, alpha0, bias0, mask=None))
    ref0 = _reference(x, alpha0, bias0)
    assert out0.shape == (B, S, F)
    assert jnp.allclose(out0, ref0, atol=1e-5, rtol=1e-5), (
        f"max abs err {jnp.max(jnp.abs(out0 - ref0))}")

    # 2) non-trivial parameters (validates per-feature alignment)
    alpha1 = 1.0 + 0.1 * jax.random.normal(ka, (F,), dtype=jnp.float32)
    bias1 = 0.1 * jax.random.normal(kb, (F,), dtype=jnp.float32)
    out1 = jax.block_until_ready(encoder_forward(x, alpha1, bias1, mask=None))
    ref1 = _reference(x, alpha1, bias1)
    assert jnp.allclose(out1, ref1, atol=1e-5, rtol=1e-5), (
        f"max abs err {jnp.max(jnp.abs(out1 - ref1))}")

    # 3) streamed two-pass path (F % 128 == 0, row padding + 2-way stats split)
    B3, S3, F3 = 4, 272, 512
    x3 = jax.random.normal(k3, (B3, S3, F3), dtype=jnp.float32)
    a3 = 1.0 + 0.1 * jax.random.normal(ka, (F3,), dtype=jnp.float32)
    b3 = 0.1 * jax.random.normal(kb, (F3,), dtype=jnp.float32)
    out3 = jax.block_until_ready(encoder_forward(x3, a3, b3, mask=None))
    ref3 = _reference(x3, a3, b3)
    assert jnp.allclose(out3, ref3, atol=1e-4, rtol=1e-4), (
        f"max abs err {jnp.max(jnp.abs(out3 - ref3))}")

    # 4) streamed path with awkward feature count (lane padding fallback)
    B4, S4, F4 = 8, 400, 200
    x4 = jax.random.normal(k4, (B4, S4, F4), dtype=jnp.float32)
    a4 = 1.0 + 0.1 * jax.random.normal(ka, (F4,), dtype=jnp.float32)
    b4 = 0.1 * jax.random.normal(kb, (F4,), dtype=jnp.float32)
    out4 = jax.block_until_ready(encoder_forward(x4, a4, b4, mask=None))
    ref4 = _reference(x4, a4, b4)
    assert jnp.allclose(out4, ref4, atol=1e-4, rtol=1e-4), (
        f"max abs err {jnp.max(jnp.abs(out4 - ref4))}")

    print("KERNEL_OK")
</pallas_src>

<mosaic_0001>
module attributes {stable_mosaic.version = 11 : i64} {
  func.func @_fused_kernel(%arg0: i32, %arg1: memref<1x32xf32, #tpu.memory_space<vmem>>, %arg2: memref<1x32xf32, #tpu.memory_space<vmem>>, %arg3: memref<16x32xf32, #tpu.memory_space<vmem>>, %arg4: memref<16x32xf32, #tpu.memory_space<vmem>>) attributes {dimension_semantics = [#tpu.dimension_semantics<arbitrary>], iteration_bounds = array<i64: 1>, scalar_prefetch = 0 : i64, scratch_operands = 0 : i64, tpu.core_type = #tpu.core_type<tc>, window_params = [{pipeline_mode = #tpu.pipeline_mode<synchronous>, transform_indices = @transform_0, window_bounds = array<i64: 1, 32>}, {pipeline_mode = #tpu.pipeline_mode<synchronous>, transform_indices = @transform_1, window_bounds = array<i64: 1, 32>}, {pipeline_mode = #tpu.pipeline_mode<synchronous>, transform_indices = @transform_2, window_bounds = array<i64: 16, 32>}, {pipeline_mode = #tpu.pipeline_mode<synchronous>, transform_indices = @transform_3, window_bounds = array<i64: 16, 32>}]} {
    %c0 = arith.constant 0 : index
    %c0_0 = arith.constant 0 : index
    %0 = vector.load %arg3[%c0, %c0_0] : memref<16x32xf32, #tpu.memory_space<vmem>>, vector<16x32xf32>
    %1 = vector.shape_cast %0 : vector<16x32xf32> to vector<1x16x32xf32>
    %cst = arith.constant dense<0.000000e+00> : vector<1xf32>
    %2 = vector.multi_reduction <add>, %1, %cst [1, 2] : vector<1x16x32xf32> to vector<1xf32>
    %3 = vector.shape_cast %2 : vector<1xf32> to vector<1x1x1xf32>
    %4 = vector.extract %3[0, 0, 0] : f32 from vector<1x1x1xf32>
    %cst_1 = arith.constant 5.120000e+02 : f32
    %5 = arith.divf %4, %cst_1 : f32
    %6 = vector.broadcast %5 : f32 to vector<16x32xf32>
    %7 = arith.subf %0, %6 : vector<16x32xf32>
    %8 = arith.mulf %7, %7 : vector<16x32xf32>
    %9 = vector.shape_cast %8 : vector<16x32xf32> to vector<1x16x32xf32>
    %cst_2 = arith.constant dense<0.000000e+00> : vector<1xf32>
    %10 = vector.multi_reduction <add>, %9, %cst_2 [1, 2] : vector<1x16x32xf32> to vector<1xf32>
    %11 = vector.shape_cast %10 : vector<1xf32> to vector<1x1x1xf32>
    %12 = vector.extract %11[0, 0, 0] : f32 from vector<1x1x1xf32>
    %cst_3 = arith.constant 5.110000e+02 : f32
    %13 = arith.divf %12, %cst_3 : f32
    %14 = math.sqrt %13 : f32
    %cst_4 = arith.constant 9.99999997E-7 : f32
    %15 = arith.addf %14, %cst_4 : f32
    %cst_5 = arith.constant 1.000000e+00 : f32
    %16 = arith.divf %cst_5, %15 : f32
    %c0_6 = arith.constant 0 : index
    %c0_7 = arith.constant 0 : index
    %17 = vector.load %arg1[%c0_6, %c0_7] : memref<1x32xf32, #tpu.memory_space<vmem>>, vector<1x32xf32>
    %18 = vector.broadcast %16 : f32 to vector<16x32xf32>
    %19 = arith.mulf %7, %18 : vector<16x32xf32>
    %20 = vector.broadcast %17 : vector<1x32xf32> to vector<16x32xf32>
    %21 = arith.mulf %20, %19 : vector<16x32xf32>
    %c0_8 = arith.constant 0 : index
    %c0_9 = arith.constant 0 : index
    %22 = vector.load %arg2[%c0_8, %c0_9] : memref<1x32xf32, #tpu.memory_space<vmem>>, vector<1x32xf32>
    %23 = vector.broadcast %22 : vector<1x32xf32> to vector<16x32xf32>
    %24 = arith.addf %21, %23 : vector<16x32xf32>
    %c0_10 = arith.constant 0 : index
    %c0_11 = arith.constant 0 : index
    %25 = vector.load %arg4[%c0_10, %c0_11] : memref<16x32xf32, #tpu.memory_space<vmem>>, vector<16x32xf32>
    tpu.vector_store %arg4[%c0_10, %c0_11], %24 {strides = array<i32>} : memref<16x32xf32, #tpu.memory_space<vmem>>, vector<16x32xf32>,
    return
  }
  func.func @transform_0(%arg0: i32) -> (i32, i32) {
    %c0_i32 = arith.constant 0 : i32
    %c0_i32_0 = arith.constant 0 : i32
    %c0_i32_1 = arith.constant 0 : i32
    return %c0_i32, %c0_i32_0 : i32, i32
  }
  func.func @transform_1(%arg0: i32) -> (i32, i32) {
    %c0_i32 = arith.constant 0 : i32
    %c0_i32_0 = arith.constant 0 : i32
    %c0_i32_1 = arith.constant 0 : i32
    return %c0_i32, %c0_i32_0 : i32, i32
  }
  func.func @transform_2(%arg0: i32) -> (i32, i32) {
    %c0_i32 = arith.constant 0 : i32
    %c0_i32_0 = arith.constant 0 : i32
    %c0_i32_1 = arith.constant 0 : i32
    return %c0_i32, %c0_i32_0 : i32, i32
  }
  func.func @transform_3(%arg0: i32) -> (i32, i32) {
    %c0_i32 = arith.constant 0 : i32
    %c0_i32_0 = arith.constant 0 : i32
    %c0_i32_1 = arith.constant 0 : i32
    return %c0_i32, %c0_i32_0 : i32, i32
  }
}

</mosaic_0001>

<bundles_post_ra>
// kernel: encoder_forward.1
= control target key start
LH: loop header
LB: loop body
LE: loop exit
PB: predicated region body
PF: predicated region fallthrough
CT: control target
= control target key end

     0   :  { %8 = vsyncpa [#allocation3], 0  ;;  %s252_s0 = inlined_call_operand.vmem [shape: f32[1,32], index: 0, kind: input, shape index: {}]   ;;  %s253_s1 = inlined_call_operand.vmem [shape: f32[1,32], index: 1, kind: input, shape index: {}]   ;;  %s254_s2 = inlined_call_operand.hbm [shape: f32[16,32], index: 2, kind: input, shape index: {}]   ;;  %s255_s3 = inlined_call_operand.hbm [shape: f32[16,32], index: 3, kind: output, shape index: {}]  }
   0x1   :  { %9 = vsyncpa [#allocation4], 0  ;;  %s186_s12 = smov [#allocation2]   ;;  %s138_s16 = scalar_lea.hbm %s254_s2, 256 }
   0x2   :  { %s19_s13 = sshll.u32 %s186_s12, 4  ;;  %p139_p0 = scmp.ne.s32.totalorder %s254_s2, %s138_s16  ;;  %s20_s13 = int_to_ptr.vmem [resolvable:$true] %s19_s13 }
   0x3   :  { %p142_p1 = scmp.lt.u32.totalorder %s138_s16, %s254_s2 }
   0x5   :  { %p144_p2 = pnand %p142_p1, %p139_p0 }
   0x7   :  { %147 = shalt.err (!%p144_p2)
}
   0x8   :  { %s148_s21 = scalar_lea.vmem %s20_s13, 256  ;;  %p153_p4 = scmp.lt.s32.totalorder %s20_s13, %s20_s13 }
   0x9   :  { %p149_p3 = scmp.ne.s32.totalorder %s20_s13, %s148_s21  ;;  %p154_p5 = scmp.lt.s32.totalorder %s148_s21, %s148_s21 }
   0xb   :  { %p155_p6 = por %p154_p5, %p153_p4 }
   0xd   :  { %p156_p7 = pnand %p155_p6, %p149_p3 }
   0xf   :  { %159 = shalt.err (!%p156_p7)
}
  0x10   :  { %s187_s22 = smov 128   ;;  %s188_s23 = smov 8  }
  0x11   :  { %25 = dma.hbm_to_vmem [thread:$0]  %s254_s2, 256, %s20_s13, [#allocation3], %s187_s22, %s187_s22, %s188_s23  }
  0x12   :  { %182 = dma.done.wait [#allocation3], 256  }
  0x13   :  { %183 = vsyncadd [#allocation3], 4294967040  ;;  %vm31_vm0 = vcmask 261120   ;;  %v29_v0 = vld [vmem:[#allocation2] sm:$0xff]  ;;  %v30_v1 = vld [vmem:[#allocation2 + $0x8] sm:$0xff]  ;;  %s189_s9 = smov [#allocation5]  }
  0x14   :  { %v32_v2 = vsel %vm31_vm0, %v29_v0, 0.0  ;;  %v33_v3 = vsel %vm31_vm0, %v30_v1, 0.0  ;;  %v120_v35 = vld [vmem:[%s252_s0] ss:$0 sm:$0xff]  ;;  %s108_s10 = sshll.u32 %s189_s9, 4  ;;  %s109_s10 = int_to_ptr.vmem [resolvable:$true] %s108_s10 }
  0x15   :  { %v34_v4 = vadd.f32 %v33_v3, %v32_v2  ;;  %v121_v39 = vld [vmem:[%s253_s1] ss:$0 sm:$0xff]  ;;  %s160_s11 = scalar_lea.vmem %s109_s10, 256  ;;  %p165_p9 = scmp.lt.s32.totalorder %s109_s10, %s109_s10 }
  0x16   :  { %p161_p8 = scmp.ne.s32.totalorder %s109_s10, %s160_s11  ;;  %p166_p10 = scmp.lt.s32.totalorder %s160_s11, %s160_s11 }
  0x17   :  { %35 = vadd.xlane.f32.xlu0 %v34_v4 }
  0x18   :  { %p167_p11 = por %p166_p10, %p165_p9 }
  0x1a   :  { %p168_p12 = pnand %p167_p11, %p161_p8 }
  0xa4   :  { %v36_v5 = vpop.xlane.xlu0 %35 }
  0xa5   :  { %v37_v6 = vrot.slane %v36_v5, 4 }
  0xa7   :  { %v38_v7 = vadd.f32 %v37_v6, %v36_v5 }
  0xa9   :  { %v39_v8 = vrot.slane %v38_v7, 2 }
  0xab   :  { %v40_v9 = vadd.f32 %v39_v8, %v38_v7 }
  0xad   :  { %v41_v10 = vrot.slane %v40_v9, 1 }
  0xaf   :  { %v42_v11 = vadd.f32 %v41_v10, %v40_v9 }
  0xb1   :  { %122 = vpush %v42_v11 }
  0xe2   :  { %s123_s2 = spop %122 }
  0xe3   :  { %s46_s26 = smul.f32 0.001953125, %s123_s2 }
  0xe5   :  { %v47_v12 = vstv %s46_s26 }
  0xe6   :  { %v48_v13 = vsub.f32 %v29_v0, %v47_v12  ;;  %v49_v14 = vsub.f32 %v30_v1, %v47_v12 }
  0xe8   :  { %v50_v15 = vmul.f32 %v48_v13, %v48_v13  ;;  %v51_v16 = vmul.f32 %v49_v14, %v49_v14 }
  0xea   :  { %v52_v17 = vsel %vm31_vm0, %v50_v15, 0.0  ;;  %v53_v18 = vsel %vm31_vm0, %v51_v16, 0.0 }
  0xeb   :  { %v54_v19 = vadd.f32 %v53_v18, %v52_v17 }
  0xed   :  { %55 = vadd.xlane.f32.xlu0 %v54_v19 }
 0x17a   :  { %v56_v20 = vpop.xlane.xlu0 %55 }
 0x17b   :  { %v57_v21 = vrot.slane %v56_v20, 4 }
 0x17d   :  { %v58_v22 = vadd.f32 %v57_v21, %v56_v20 }
 0x17f   :  { %v59_v23 = vrot.slane %v58_v22, 2 }
 0x181   :  { %v60_v24 = vadd.f32 %v59_v23, %v58_v22 }
 0x183   :  { %v61_v25 = vrot.slane %v60_v24, 1 }
 0x185   :  { %v62_v26 = vadd.f32 %v61_v25, %v60_v24 }
 0x187   :  { %124 = vpush %v62_v26 }
 0x1b8   :  { %s125_s27 = spop %124 }
 0x1b9   :  { %s66_s28 = smul.f32 0.0019569471, %s125_s27 }
 0x1bb   :  { %v67_v27 = vstv %s66_s28 }
 0x1bc   :  { %134 = vrsqrt.f32 %v67_v27  ;;  %vm70_vm1 = vcmp.eq.f32.partialorder %v67_v27, inf  ;;  %v73_v30 = vand.u32 2147483648, %v67_v27  ;;  %vm72_vm2 = vcmp.eq.f32.partialorder %v67_v27, 0.0 }
 0x1c6   :  { %v135_v28 = vpop.eup %134 }
 0x1c7   :  { %v69_v29 = vmul.f32 %v135_v28, %v67_v27 }
 0x1c9   :  { %v71_v31 = vsel %vm70_vm1, %v67_v27, %v69_v29 }
 0x1ca   :  { %v74_v32 = vsel %vm72_vm2, %v73_v30, %v71_v31 }
 0x1cb   :  { %126 = vpush %v74_v32 }
 0x1fc   :  { %s127_s29 = spop %126 }
 0x1fd   :  { %s76_s30 = sadd.f32 1e-06, %s127_s29 }
 0x1ff   :  { %v77_v33 = vstv %s76_s30 }
 0x200   :  { %136 = vrcp.f32 %v77_v33 }
 0x20a   :  { %v137_v34 = vpop.eup %136 }
 0x20b   :  { %128 = vpush %v137_v34 }
 0x23c   :  { %s129_s4 = spop %128 }
 0x23d   :  { %v81_v36 = vstv %s129_s4 }
 0x23e   :  { %v82_v37 = vmul.f32 %v81_v36, %v48_v13  ;;  %v83_v38 = vmul.f32 %v81_v36, %v49_v14 }
 0x240   :  { %v90_v40 = vmul.f32 %v120_v35, %v82_v37  ;;  %v91_v41 = vmul.f32 %v120_v35, %v83_v38 }
 0x242   :  { %v99_v42 = vadd.f32 %v121_v39, %v90_v40  ;;  %v100_v43 = vadd.f32 %v121_v39, %v91_v41 }
 0x244   :  { %101 = vst.msk [vmem:[#allocation5] sm:$0xff] %vm31_vm0, %v99_v42  ;;  %102 = vst.msk [vmem:[#allocation5 + $0x8] sm:$0xff] %vm31_vm0, %v100_v43 }
 0x245   :  { %171 = shalt.err (!%p168_p12)
}
 0x246   :  { %s172_s12 = scalar_lea.hbm %s255_s3, 256 }
 0x247   :  { %p173_p13 = scmp.ne.s32.totalorder %s255_s3, %s172_s12  ;;  %p176_p0 = scmp.lt.u32.totalorder %s172_s12, %s255_s3 }
 0x249   :  { %p178_p1 = pnand %p176_p0, %p173_p13 }
 0x24b   :  { %181 = shalt.err (!%p178_p1)
}
 0x24c   :  { %114 = dma.vmem_to_hbm [thread:$0]  %s109_s10, 256, %s255_s3, [#allocation4], %s187_s22, %s187_s22, %s188_s23  }
 0x24d   :  { %184 = dma.done.wait [#allocation4], 256  }
 0x24e   :  { %185 = vsyncadd [#allocation4], 4294967040 }
 0x24f   :  { %118 = vsyncpa [#allocation3], 1 }
 0x250   :  { %119 = vsyncpa [#allocation4], 1 }

</bundles_post_ra>
